<compile_context>
chip_gen: v5e
topology: v5e:2x2
jax: 0.10.0
libtpu: 0.0.40
codegen_flags: <defaults>
</compile_context>

<pallas_src>
import math

import jax
import jax.numpy as jnp
from jax import lax
from jax.experimental import pallas as pl
from jax.experimental.pallas import tpu as pltpu


def _context_pooler_kernel(x_ref, w_ref, b_ref, o_ref):
    """One (tm, tn) output tile of gelu(x @ W.T + b), full-K in a single dot."""
    # x_ref: (tm, H) CLS tokens; w_ref: (tn, H) PyTorch [out, in] weight panel;
    # b_ref: (1, tn). Contract the shared H (input-feature) axis of both operands
    # in-kernel so the wrapper never materializes weight.T in HBM.
    z = lax.dot_general(
        x_ref[...],
        w_ref[...],
        dimension_numbers=(((1,), (1,)), ((), ())),   # x[:, k] * w[:, k] -> (tm, tn)
        preferred_element_type=jnp.float32,
    )
    z = z + b_ref[...].astype(jnp.float32)            # (1, tn) broadcast over tm
    # Exact (erf-based) GELU — matches transformers' default "gelu" activation.
    g = 0.5 * z * (1.0 + lax.erf(z * (1.0 / math.sqrt(2.0))))
    o_ref[...] = g.astype(o_ref.dtype)


def _pick_tm(B, H, itemsize, budget_bytes):
    """Batch tile. Prefer the full batch (keeps the M grid at 1 so W panels are
    never re-streamed); otherwise the largest multiple of 8 dividing B."""
    if 2 * B * H * itemsize <= budget_bytes:          # double-buffered x panel
        return B
    t = min(512, (B // 8) * 8)
    t = (t // 8) * 8
    while t >= 8:
        if B % t == 0:
            return t
        t -= 8
    return B


def _pick_tn(H, cap, tm, itemsize, budget_bytes):
    """Output-feature tile: multiple of 128 (or the full H), sized so the
    double-buffered full-K panels fit the VMEM budget, preferring an even block
    count for v7x's 2-TensorCore megacore split of the parallel N axis."""

    def fits(tn):
        return 2 * (tm * H + tn * H + tn + tm * tn) * itemsize <= budget_bytes

    if H <= cap and fits(H):
        return H
    best_any = None
    t = min(cap, (H // 128) * 128)
    t = (t // 128) * 128
    while t >= 128:
        if H % t == 0 and fits(t):
            if (H // t) % 2 == 0:
                return t                               # even block count: v7x balance
            if best_any is None:
                best_any = t
        t -= 128
    if best_any is not None:
        return best_any
    # TODO(synk): no lane-aligned divisor of H — fall back to a single full panel,
    # which may exceed the scoped VMEM budget for very large, awkward H.
    return H


def context_pooling(hidden_states, attention_mask, weight, bias):
    """hidden_states: [B, S, H]; attention_mask: [B, S] (ignored, like the module);
    weight: [H, H] (PyTorch nn.Linear layout, [out, in]); bias: [H].

    Returns [B, H] = gelu(hidden_states[:, 0] @ weight.T + bias)  (exact GELU).
    """
    del attention_mask  # The wrapped ContextPooler ignores its second argument.

    B, S, H = hidden_states.shape
    assert weight.shape == (H, H)
    assert bias.shape == (H,)

    # First-token pooling outside the kernel: only B*H elements ever leave HBM for
    # this step, instead of streaming the whole (B, S, H) slab.
    x0 = hidden_states[:, 0, :]                        # (B, H)
    bias2 = bias.reshape(1, H)                         # lane-dense (1, H)
    # NOTE: W is streamed in its native [out, in] layout — no transpose in HBM.
    # (Optional further win on v6e/v7x: cast W/x0 to bf16 here; MXU is natively bf16
    #  and f32 accumulation is kept by preferred_element_type.)

    itemsize = jnp.dtype(hidden_states.dtype).itemsize
    panel_budget = 40 * 1024 * 1024                    # fits v5e/v6e/v7x once limit set

    tm = _pick_tm(B, H, itemsize, budget_bytes=8 * 1024 * 1024)
    tn = _pick_tn(H, cap=512, tm=tm, itemsize=itemsize, budget_bytes=panel_budget)

    est_vmem = 2 * (tm * H + tn * H + tn + tm * tn) * itemsize
    vmem_limit = int(min(48 * 1024 * 1024, max(32 * 1024 * 1024, est_vmem + (2 << 20))))

    cost = pl.CostEstimate(
        flops=2 * B * H * H,
        transcendentals=B * H,
        bytes_accessed=(B * H + H * H + H + B * H) * itemsize,
    )

    n_blocks = H // tn
    m_blocks = B // tm

    out = pl.pallas_call(
        _context_pooler_kernel,
        out_shape=jax.ShapeDtypeStruct((B, H), hidden_states.dtype),
        grid_spec=pltpu.PrefetchScalarGridSpec(
            num_scalar_prefetch=0,
            # N (output features) outermost: W panel index depends only on j, so each
            # W panel is DMA'd exactly once even when the batch is tiled.
            grid=(n_blocks, m_blocks),
            in_specs=[
                pl.BlockSpec((tm, H), lambda j, i: (i, 0)),    # x0 panel (full K)
                pl.BlockSpec((tn, H), lambda j, i: (j, 0)),    # W panel, [out, in] layout
                pl.BlockSpec((1, tn), lambda j, i: (0, j)),    # bias tile
            ],
            out_specs=pl.BlockSpec((tm, tn), lambda j, i: (i, j)),
        ),
        compiler_params=pltpu.CompilerParams(
            dimension_semantics=("parallel", "parallel"),
            vmem_limit_bytes=vmem_limit,
        ),
        cost_estimate=cost,
    )(x0, weight, bias2)

    return out


def _reference(hidden_states, weight, bias):
    # Pure-JAX reference matching the PyTorch forward (eval mode, exact GELU).
    x0 = hidden_states[:, 0, :]
    z = jnp.dot(x0, weight.T, precision=jax.lax.Precision.HIGHEST) + bias
    return jax.nn.gelu(z, approximate=False)


if __name__ == "__main__":
    key = jax.random.PRNGKey(0)
    B, S, H = 2, 8, 32

    k1, k2, k3 = jax.random.split(key, 3)
    hidden_states = jax.random.normal(k1, (B, S, H), dtype=jnp.float32)
    # Deterministic attention mask (ignored by the module, kept for signature parity).
    lengths = jnp.array([6, 4], dtype=jnp.int32)
    attention_mask = (jnp.arange(S)[None, :] < lengths[:, None]).astype(jnp.int32)
    # nn.Linear(H, H) parameters in PyTorch layout: weight [out, in], bias [out].
    weight = jax.random.normal(k2, (H, H), dtype=jnp.float32) * (1.0 / jnp.sqrt(H))
    bias = jax.random.normal(k3, (H,), dtype=jnp.float32) * 0.02

    out = context_pooling(hidden_states, attention_mask, weight, bias)
    out = jax.block_until_ready(out)

    ref = _reference(hidden_states, weight, bias)
    assert out.shape == (B, H)
    assert jnp.allclose(out, ref, atol=1e-4, rtol=1e-4), "mismatch vs reference"

    print("KERNEL_OK")
</pallas_src>

<mosaic_0001>
module attributes {stable_mosaic.version = 11 : i64} {
  func.func @_context_pooler_kernel(%arg0: i32, %arg1: i32, %arg2: memref<2x32xf32, #tpu.memory_space<vmem>>, %arg3: memref<32x32xf32, #tpu.memory_space<vmem>>, %arg4: memref<1x32xf32, #tpu.memory_space<vmem>>, %arg5: memref<2x32xf32, #tpu.memory_space<vmem>>) attributes {dimension_semantics = [#tpu.dimension_semantics<parallel>, #tpu.dimension_semantics<parallel>], iteration_bounds = array<i64: 1, 1>, scalar_prefetch = 0 : i64, scratch_operands = 0 : i64, tpu.core_type = #tpu.core_type<tc>, window_params = [{transform_indices = @transform_0, window_bounds = array<i64: 2, 32>}, {transform_indices = @transform_1, window_bounds = array<i64: 32, 32>}, {transform_indices = @transform_2, window_bounds = array<i64: 1, 32>}, {transform_indices = @transform_3, window_bounds = array<i64: 2, 32>}]} {
    %c0 = arith.constant 0 : index
    %c0_0 = arith.constant 0 : index
    %0 = vector.load %arg2[%c0, %c0_0] : memref<2x32xf32, #tpu.memory_space<vmem>>, vector<2x32xf32>
    %c0_1 = arith.constant 0 : index
    %c0_2 = arith.constant 0 : index
    %1 = vector.load %arg3[%c0_1, %c0_2] : memref<32x32xf32, #tpu.memory_space<vmem>>, vector<32x32xf32>
    %cst = arith.constant dense<0.000000e+00> : vector<2x32xf32>
    %2 = tpu.matmul %0, %1, %cst {dimension_numbers = #tpu.dot_dimension_numbers<[1], [1], [0], [0], [0, 0, 1, 0], [], []>} : vector<2x32xf32>, vector<32x32xf32>, vector<2x32xf32> -> vector<2x32xf32>
    %c0_3 = arith.constant 0 : index
    %c0_4 = arith.constant 0 : index
    %3 = vector.load %arg4[%c0_3, %c0_4] : memref<1x32xf32, #tpu.memory_space<vmem>>, vector<1x32xf32>
    %4 = vector.broadcast %3 : vector<1x32xf32> to vector<2x32xf32>
    %5 = arith.addf %2, %4 : vector<2x32xf32>
    %cst_5 = arith.constant 5.000000e-01 : f32
    %6 = vector.broadcast %cst_5 : f32 to vector<2x32xf32>
    %7 = arith.mulf %6, %5 : vector<2x32xf32>
    %cst_6 = arith.constant 0.707106769 : f32
    %8 = vector.broadcast %cst_6 : f32 to vector<2x32xf32>
    %9 = arith.mulf %5, %8 : vector<2x32xf32>
    %10 = math.erf %9 : vector<2x32xf32>
    %cst_7 = arith.constant 1.000000e+00 : f32
    %11 = vector.broadcast %cst_7 : f32 to vector<2x32xf32>
    %12 = arith.addf %11, %10 : vector<2x32xf32>
    %13 = arith.mulf %7, %12 : vector<2x32xf32>
    %c0_8 = arith.constant 0 : index
    %c0_9 = arith.constant 0 : index
    %14 = vector.load %arg5[%c0_8, %c0_9] : memref<2x32xf32, #tpu.memory_space<vmem>>, vector<2x32xf32>
    tpu.vector_store %arg5[%c0_8, %c0_9], %13 {strides = array<i32>} : memref<2x32xf32, #tpu.memory_space<vmem>>, vector<2x32xf32>,
    return
  }
  func.func @transform_0(%arg0: i32, %arg1: i32) -> (i32, i32) {
    %c0_i32 = arith.constant 0 : i32
    %c0_i32_0 = arith.constant 0 : i32
    return %arg1, %c0_i32 : i32, i32
  }
  func.func @transform_1(%arg0: i32, %arg1: i32) -> (i32, i32) {
    %c0_i32 = arith.constant 0 : i32
    %c0_i32_0 = arith.constant 0 : i32
    return %arg0, %c0_i32 : i32, i32
  }
  func.func @transform_2(%arg0: i32, %arg1: i32) -> (i32, i32) {
    %c0_i32 = arith.constant 0 : i32
    %c0_i32_0 = arith.constant 0 : i32
    return %c0_i32, %arg0 : i32, i32
  }
  func.func @transform_3(%arg0: i32, %arg1: i32) -> (i32, i32) {
    %c0_i32 = arith.constant 0 : i32
    return %arg1, %arg0 : i32, i32
  }
}

</mosaic_0001>

<bundles_post_ra>
// kernel: tpu_custom_call.1
= control target key start
LH: loop header
LB: loop body
LE: loop exit
PB: predicated region body
PF: predicated region fallthrough
CT: control target
= control target key end

     0   :  { %8 = vsyncpa [#allocation3], 0  ;;  %s283_s0 = inlined_call_operand.hbm [shape: f32[2,32], index: 0, kind: input, shape index: {}]   ;;  %s284_s1 = inlined_call_operand.hbm [shape: f32[32,32], index: 1, kind: input, shape index: {}]   ;;  %s285_s2 = inlined_call_operand.vmem [shape: f32[1,32], index: 2, kind: input, shape index: {}]   ;;  %s286_s3 = inlined_call_operand.hbm [shape: f32[2,32], index: 3, kind: output, shape index: {}]  }
   0x1   :  { %9 = vsyncpa [#allocation6], 0 }
   0x2   :  { %10 = vsyncpa [#allocation4], 0  ;;  %s16_s14 = sshll.u32 %s283_s0, 4  ;;  %s246_s15 = smov [#allocation2]   ;;  %s17_s14 = int_to_ptr.hbm [resolvable:$true] %s16_s14 }
   0x3   :  { %s18_s16 = sshll.u32 %s246_s15, 4  ;;  %s26_s19 = sshll.u32 %s284_s1, 4  ;;  %s19_s16 = int_to_ptr.vmem [resolvable:$true] %s18_s16  ;;  %s27_s19 = int_to_ptr.hbm [resolvable:$true] %s26_s19 }
   0x4   :  { %21 = dma.hbm_to_vmem [thread:$0]  %s17_s14, 32, %s19_s16, [#allocation3]  }
   0x5   :  { %s247_s20 = smov [#allocation5]   ;;  %s248_s22 = smov 128  }
   0x6   :  { %s28_s21 = sshll.u32 %s247_s20, 4  ;;  %s249_s23 = smov 8   ;;  %s29_s21 = int_to_ptr.vmem [resolvable:$true] %s28_s21 }
   0x7   :  { %34 = dma.hbm_to_vmem [thread:$0]  %s27_s19, 512, %s29_s21, [#allocation6], %s248_s22, %s248_s22, %s249_s23  }
   0x8   :  { %240 = dma.done.wait [#allocation3], 32  }
   0x9   :  { %241 = vsyncadd [#allocation3], 4294967264 }
   0xa   :  { %242 = dma.done.wait [#allocation6], 512  }
   0xb   :  { %243 = vsyncadd [#allocation6], 4294966784  ;;  %vm54_vm0 = vcmask 261120   ;;  %v49_v0 = vld [vmem:[#allocation5 + $0x18] sm:$0xff]  ;;  %v48_v1 = vld [vmem:[#allocation5 + $0x10] sm:$0xff]  ;;  %s143_s27 = sshll.u32 %s286_s3, 4  ;;  %s144_s27 = int_to_ptr.hbm [resolvable:$true] %s143_s27 }
   0xc   :  { %154 = vmatpush.xpose.msk.msra.mxu0 %vm54_vm0, %v49_v0  ;;  %v47_v2 = vld [vmem:[#allocation5 + $0x8] sm:$0xff]  ;;  %v46_v3 = vld [vmem:[#allocation5] sm:$0xff]  ;;  %v45_v4 = vld [vmem:[#allocation2] sm:$0x3]  ;;  %vm134_vm5 = vcmask 254976  }
   0xd   :  { %v165_v5 = vld [vmem:[%s285_s2] ss:$0 sm:$0xff]  ;;  %s250_s2 = smov [#allocation7]  }
   0xe   :  { %s141_s24 = sshll.u32 %s250_s2, 4  ;;  %s142_s24 = int_to_ptr.vmem [resolvable:$true] %s141_s24 }
  0x10   :  { %155 = vmatpush.xpose.msk.msra.mxu0 %vm54_vm0, %v48_v1 }
  0x14   :  { %156 = vmatpush.xpose.msk.msra.mxu0 %vm54_vm0, %v47_v2 }
  0x18   :  { %157 = vmatpush.xpose.msk.msra.mxu0 %vm54_vm0, %v46_v3 }
  0x1b   :  { %158 = vmatmul.msk.f32.vlgmr.msra.gmra.mxu0 %vm54_vm0, %v45_v4 }
  0x98   :  { %v87_v6 = vpop.f32.mrf.mxu0 }
  0x99   :  { %v88_v7 = vadd.f32 %v165_v5, %v87_v6 }
  0x9b   :  { %v91_v8 = vmul.f32 0.70710677, %v88_v7  ;;  %v90_v44 = vmul.f32 0.5, %v88_v7 }
  0x9d   :  { %v92_v9 = vmul.f32 %v91_v8, %v91_v8 }
  0x9f   :  { %v93_v10 = vmin.f32 %v92_v9, 16.0 }
  0xa1   :  { %v94_v11 = vmul.f32 2.1237322e-06, %v93_v10  ;;  %v105_v12 = vmul.f32 3.8918573e-05, %v93_v10 }
  0xa3   :  { %v95_v13 = vadd.f32 0.00028619796, %v94_v11  ;;  %v106_v14 = vadd.f32 0.001143296, %v105_v12 }
  0xa5   :  { %v96_v15 = vmul.f32 %v95_v13, %v93_v10  ;;  %v107_v16 = vmul.f32 %v106_v14, %v93_v10 }
  0xa7   :  { %v108_v17 = vadd.f32 0.014752088, %v107_v16  ;;  %v97_v18 = vadd.f32 0.0036580483, %v96_v15 }
  0xa9   :  { %v109_v19 = vmul.f32 %v108_v17, %v93_v10  ;;  %v98_v21 = vmul.f32 %v97_v18, %v93_v10 }
  0xab   :  { %v110_v20 = vadd.f32 0.112945676, %v109_v19  ;;  %v99_v24 = vadd.f32 0.05243302, %v98_v21 }
  0xad   :  { %v111_v22 = vmul.f32 %v110_v20, %v93_v10  ;;  %v100_v27 = vmul.f32 %v99_v24, %v93_v10 }
  0xaf   :  { %v112_v23 = vadd.f32 0.4994258, %v111_v22  ;;  %v101_v28 = vadd.f32 0.18741608, %v100_v27 }
  0xb1   :  { %v113_v25 = vmul.f32 %v112_v23, %v93_v10  ;;  %v102_v30 = vmul.f32 %v101_v28, %v93_v10 }
  0xb3   :  { %v114_v26 = vadd.f32 1.0, %v113_v25  ;;  %v103_v34 = vadd.f32 1.1283791, %v102_v30 }
  0xb5   :  { %166 = vrcp.f32 %v114_v26  ;;  %v126_v33 = vand.u32 2147483648, %v114_v26  ;;  %v124_v36 = vand.u32 2147483647, %v114_v26  ;;  %vm120_vm2 = vweird.f32 %v114_v26 }
  0xb6   :  { %v104_v39 = vmul.f32 %v103_v34, %v91_v8 }
  0xb7   :  { %v127_v38 = vor.u32 1.1754944e-38, %v126_v33  ;;  %vm125_vm4 = vcmp.eq.f32.partialorder %v124_v36, 8.507059e+37 }
  0xbb   :  { %v167_v29 = vpop.eup %166 }
  0xbc   :  { %v116_v31 = vmul.f32 %v167_v29, %v114_v26  ;;  %vm121_vm1 = vweird.f32 %v167_v29 }
  0xbd   :  { %vm122_vm3 = vmor %vm120_vm2, %vm121_vm1 }
  0xbe   :  { %v117_v32 = vsub.f32 1.0, %v116_v31 }
  0xc0   :  { %v118_v35 = vmul.f32 %v167_v29, %v117_v32 }
  0xc2   :  { %v119_v37 = vadd.f32 %v167_v29, %v118_v35 }
  0xc4   :  { %v123_v40 = vsel %vm122_vm3, %v167_v29, %v119_v37 }
  0xc5   :  { %v128_v41 = vsel %vm125_vm4, %v127_v38, %v123_v40 }
  0xc6   :  { %v129_v42 = vmul.f32 %v128_v41, %v104_v39 }
  0xc8   :  { %v159_v43 = vclamps-f32 %v129_v42, 1.0 }
  0xca   :  { %v132_v45 = vadd.f32 1.0, %v159_v43 }
  0xcc   :  { %v133_v46 = vmul.f32 %v132_v45, %v90_v44 }
  0xce   :  { %135 = vst.msk [vmem:[#allocation7] sm:$0x3] %vm134_vm5, %v133_v46 }
  0xcf   :  { %146 = dma.vmem_to_hbm [thread:$0]  %s142_s24, 32, %s144_s27, [#allocation4]  }
  0xd0   :  { %244 = dma.done.wait [#allocation4], 32  }
  0xd1   :  { %245 = vsyncadd [#allocation4], 4294967264 }
  0xd2   :  { %151 = vsyncpa [#allocation3], 1 }
  0xd3   :  { %152 = vsyncpa [#allocation6], 1 }
  0xd4   :  { %153 = vsyncpa [#allocation4], 1 }

</bundles_post_ra>
